<compile_context>
chip_gen: v5e
topology: v5e:2x2
jax: 0.10.0
libtpu: 0.0.40
codegen_flags: <defaults>
</compile_context>

<pallas_src>
import math
import functools

import jax
import jax.numpy as jnp
from jax import lax
from jax.experimental import pallas as pl
from jax.experimental.pallas import tpu as pltpu


def arcface_kernel(has_tgt_ref, logits_ref, labels_ref, loss_ref, valid_ref,
                   m_sc, l_sc, t_sc, *, s, cos_m, sin_m, block_c, n_cblocks):
    """Processes one (block_n, block_c) tile of the scaled-cosine logits."""
    i = pl.program_id(0)
    j = pl.program_id(1)

    @pl.when(j == 0)
    def _init():
        m_sc[...] = jnp.full_like(m_sc, -jnp.inf)
        l_sc[...] = jnp.zeros_like(l_sc)
        t_sc[...] = jnp.zeros_like(t_sc)

    x = logits_ref[...].astype(jnp.float32)      # (bn, bc) cosine logits
    lbl = labels_ref[...]                         # (bn, 1) int32 labels
    bn, bc = x.shape
    is_valid = lbl != -1                          # (bn, 1)

    def lse_update(z):
        # Online log-sum-exp across class blocks.
        m_new = jnp.maximum(m_sc[...], jnp.max(z, axis=-1, keepdims=True))
        l_sc[...] = (l_sc[...] * jnp.exp(m_sc[...] - m_new)
                     + jnp.sum(jnp.exp(z - m_new), axis=-1, keepdims=True))
        m_sc[...] = m_new

    has_tgt = has_tgt_ref[i * n_cblocks + j]      # scalar from SMEM

    @pl.when(has_tgt != 0)
    def _hot():
        # Per-row local target position inside this class block.  Rows whose
        # target lives in another block (or invalid rows) get a value outside
        # [0, bc), so the iota comparison below never matches them.
        loc = jnp.where(is_valid, lbl - j * block_c, -1)                # (bn,1)
        in_blk = ((loc >= 0) & (loc < block_c)).astype(jnp.float32)     # (bn,1)
        onehot = lax.broadcasted_iota(jnp.int32, (bn, bc), 1) == loc    # (bn,bc)

        # ---- per-row margin math (N work instead of N*C) ----
        t = jnp.sum(jnp.where(onehot, x, 0.0), axis=-1, keepdims=True)  # (bn,1)
        tcl = jnp.clip(t, -1.0, 1.0)
        # cos(arccos(t) + m) = t*cos(m) - sqrt(1 - t^2)*sin(m)  (exact, |t|<=1)
        marg = tcl * cos_m - jnp.sqrt(jnp.maximum(1.0 - tcl * tcl, 0.0)) * sin_m
        delta = (marg - t) * s                                           # (bn,1)

        # Scaled logits; the single target entry picks up the margin delta.
        lse_update(x * s + jnp.where(onehot, delta, 0.0))
        # Running scaled+margined target logit (only if the target is here).
        t_sc[...] = t_sc[...] + in_blk * (marg * s)

    @pl.when(has_tgt == 0)
    def _cold():
        lse_update(x * s)

    @pl.when(j == pl.num_programs(1) - 1)
    def _finalize():
        validf = is_valid.astype(jnp.float32)
        lse = m_sc[...] + jnp.log(l_sc[...])
        loss_ref[...] = (lse - t_sc[...]) * validf     # 0 loss for ignored rows
        valid_ref[...] = validf


def _pick_block(dim, target, multiple):
    """Largest divisor of `dim` that is a multiple of `multiple` and <= target."""
    upper = min(target, dim)
    cand = upper - (upper % multiple)
    while cand >= multiple:
        if dim % cand == 0:
            return cand
        cand -= multiple
    return dim


def arcface_loss(logits, labels, s=64.0, margin=0.3,
                 block_n=None, block_c=None, vmem_limit_bytes=None):
    N, C = logits.shape
    row_mult = 16 if logits.dtype == jnp.bfloat16 else 8

    if block_n is None:
        target_n = 256
        # Keep >= 2 row tiles so v7x megacore shards the batch across both TCs.
        if N <= target_n and N >= 2 * row_mult:
            target_n = N // 2
        bn = _pick_block(N, target_n, row_mult)
    else:
        bn = block_n
    # bc capped at 4096 for v7x's 64 MiB VMEM per TC (can raise to 8192 on
    # v5e/v6e's 128 MiB VMEM to shave grid-step overhead).
    bc = _pick_block(C, 4096, 128) if block_c is None else block_c
    assert N % bn == 0 and C % bc == 0, (N, C, bn, bc)

    n_rblocks, n_cblocks = N // bn, C // bc

    if vmem_limit_bytes is None:
        # Double-buffered input tiles + full-tile f32 temporaries (upcast x,
        # z, exp pass, iota/one-hot) + slack, kept under v7x's 64 MiB VMEM.
        in_bytes = bn * bc * jnp.dtype(logits.dtype).itemsize
        tmp_bytes = 4 * bn * bc * 4
        vmem_limit_bytes = int(min(max(2 * in_bytes + tmp_bytes + (4 << 20),
                                       32 << 20),
                                   56 << 20))

    labels2d = labels.astype(jnp.int32).reshape(N, 1)

    # Tiny (n_rblocks * n_cblocks,) table: does row-tile i contain any target
    # in class-block j?  Scalar-prefetched into SMEM so target-free tiles skip
    # the whole one-hot/margin branch.
    lbl_i32 = labels.astype(jnp.int32)
    in_range = (lbl_i32 >= 0) & (lbl_i32 < C)
    row_blk = jnp.arange(N, dtype=jnp.int32) // bn
    col_blk = jnp.clip(lbl_i32, 0, C - 1) // bc
    has_target = jnp.zeros((n_rblocks * n_cblocks,), jnp.int32).at[
        row_blk * n_cblocks + col_blk].add(in_range.astype(jnp.int32))

    kernel = functools.partial(
        arcface_kernel,
        s=float(s),
        cos_m=math.cos(margin),
        sin_m=math.sin(margin),
        block_c=bc,
        n_cblocks=n_cblocks,
    )

    loss_rows, valid_rows = pl.pallas_call(
        kernel,
        out_shape=(
            jax.ShapeDtypeStruct((N, 1), jnp.float32),
            jax.ShapeDtypeStruct((N, 1), jnp.float32),
        ),
        grid_spec=pltpu.PrefetchScalarGridSpec(
            num_scalar_prefetch=1,
            grid=(n_rblocks, n_cblocks),
            in_specs=[
                pl.BlockSpec((bn, bc), lambda i, j, ht: (i, j)),
                pl.BlockSpec((bn, 1), lambda i, j, ht: (i, 0)),
            ],
            out_specs=[
                pl.BlockSpec((bn, 1), lambda i, j, ht: (i, 0)),
                pl.BlockSpec((bn, 1), lambda i, j, ht: (i, 0)),
            ],
            scratch_shapes=[
                pltpu.VMEM((bn, 1), jnp.float32),   # running max
                pltpu.VMEM((bn, 1), jnp.float32),   # running sum of exp
                pltpu.VMEM((bn, 1), jnp.float32),   # running target logit
            ],
        ),
        compiler_params=pltpu.CompilerParams(
            dimension_semantics=("parallel", "arbitrary"),
            vmem_limit_bytes=vmem_limit_bytes,
        ),
    )(has_target, logits, labels2d)

    # Mean reduction over valid rows (PyTorch nn.CrossEntropyLoss 'mean').
    return jnp.sum(loss_rows) / jnp.maximum(jnp.sum(valid_rows), 1.0)


def arcface_ref(logits, labels, s=64.0, margin=0.3):
    """Pure-JAX reference mirroring the PyTorch forward (arccos/cos path)."""
    N, C = logits.shape
    valid = labels != -1
    onehot = (jax.nn.one_hot(jnp.clip(labels, 0, C - 1), C, dtype=jnp.bool_)
              & valid[:, None])
    theta = jnp.arccos(jnp.clip(logits.astype(jnp.float32), -1.0, 1.0))
    theta = jnp.where(onehot, theta + margin, theta)
    z = jnp.cos(theta) * s
    logp = jax.nn.log_softmax(z, axis=-1)
    per_row = -jnp.sum(jnp.where(onehot, logp, 0.0), axis=-1)
    return jnp.sum(per_row * valid) / jnp.maximum(jnp.sum(valid), 1)


if __name__ == "__main__":
    key = jax.random.PRNGKey(0)
    k1, k2 = jax.random.split(key)

    N, C = 16, 512  # small demo shape; with bn=8, bc=128 -> grid (2, 4)
    # Cosine-similarity style logits in (-1, 1).
    logits = jax.random.uniform(k1, (N, C), dtype=jnp.float32,
                                minval=-0.95, maxval=0.95)
    labels = jax.random.randint(k2, (N,), 0, C, dtype=jnp.int32)
    # Force the first row tile's targets into class block 0 so several
    # (row-tile, class-block) pairs are target-free and exercise the gated
    # cold path; keep one ignored row for the label == -1 path.
    labels = labels.at[:8].set(labels[:8] % 128)
    labels = labels.at[3].set(-1)

    loss = arcface_loss(logits, labels, s=64.0, margin=0.3,
                        block_n=8, block_c=128)
    loss = jax.block_until_ready(loss)

    ref = arcface_ref(logits, labels, s=64.0, margin=0.3)
    assert jnp.allclose(loss, ref, rtol=1e-4, atol=1e-4), (loss, ref)

    print("KERNEL_OK")
</pallas_src>

<mosaic_0001>
module attributes {stable_mosaic.version = 11 : i64} {
  func.func @arcface_kernel(%arg0: i32, %arg1: i32, %arg2: memref<8xi32, #tpu.memory_space<smem>>, %arg3: memref<8x128xf32, #tpu.memory_space<vmem>>, %arg4: memref<8x1xi32, #tpu.memory_space<vmem>>, %arg5: memref<8x1xf32, #tpu.memory_space<vmem>>, %arg6: memref<8x1xf32, #tpu.memory_space<vmem>>, %arg7: memref<8x1xf32, #tpu.memory_space<vmem>>, %arg8: memref<8x1xf32, #tpu.memory_space<vmem>>, %arg9: memref<8x1xf32, #tpu.memory_space<vmem>>) attributes {dimension_semantics = [#tpu.dimension_semantics<parallel>, #tpu.dimension_semantics<arbitrary>], iteration_bounds = array<i64: 2, 4>, scalar_prefetch = 1 : i64, scratch_operands = 3 : i64, tpu.core_type = #tpu.core_type<tc>, window_params = [{transform_indices = @transform_0, window_bounds = array<i64: 8, 128>}, {transform_indices = @transform_1, window_bounds = array<i64: 8, 1>}, {transform_indices = @transform_2, window_bounds = array<i64: 8, 1>}, {transform_indices = @transform_3, window_bounds = array<i64: 8, 1>}]} {
    %c0_i32 = arith.constant 0 : i32
    %0 = arith.cmpi eq, %arg1, %c0_i32 : i32
    %1 = arith.extui %0 : i1 to i32
    %c0_i32_0 = arith.constant 0 : i32
    %2 = arith.cmpi ne, %1, %c0_i32_0 : i32
    scf.if %2 {
      %cst = arith.constant 0xFF800000 : f32
      %20 = vector.broadcast %cst : f32 to vector<8x1xf32>
      %c0_9 = arith.constant 0 : index
      %c0_10 = arith.constant 0 : index
      %21 = vector.load %arg7[%c0_9, %c0_10] : memref<8x1xf32, #tpu.memory_space<vmem>>, vector<8x1xf32>
      tpu.vector_store %arg7[%c0_9, %c0_10], %20 {strides = array<i32>} : memref<8x1xf32, #tpu.memory_space<vmem>>, vector<8x1xf32>,
      %cst_11 = arith.constant 0.000000e+00 : f32
      %22 = vector.broadcast %cst_11 : f32 to vector<8x1xf32>
      %c0_12 = arith.constant 0 : index
      %c0_13 = arith.constant 0 : index
      %23 = vector.load %arg8[%c0_12, %c0_13] : memref<8x1xf32, #tpu.memory_space<vmem>>, vector<8x1xf32>
      tpu.vector_store %arg8[%c0_12, %c0_13], %22 {strides = array<i32>} : memref<8x1xf32, #tpu.memory_space<vmem>>, vector<8x1xf32>,
      %cst_14 = arith.constant 0.000000e+00 : f32
      %24 = vector.broadcast %cst_14 : f32 to vector<8x1xf32>
      %c0_15 = arith.constant 0 : index
      %c0_16 = arith.constant 0 : index
      %25 = vector.load %arg9[%c0_15, %c0_16] : memref<8x1xf32, #tpu.memory_space<vmem>>, vector<8x1xf32>
      tpu.vector_store %arg9[%c0_15, %c0_16], %24 {strides = array<i32>} : memref<8x1xf32, #tpu.memory_space<vmem>>, vector<8x1xf32>,
    } else {
    }
    %c0 = arith.constant 0 : index
    %c0_1 = arith.constant 0 : index
    %3 = vector.load %arg3[%c0, %c0_1] : memref<8x128xf32, #tpu.memory_space<vmem>>, vector<8x128xf32>
    %c0_2 = arith.constant 0 : index
    %c0_3 = arith.constant 0 : index
    %4 = vector.load %arg4[%c0_2, %c0_3] : memref<8x1xi32, #tpu.memory_space<vmem>>, vector<8x1xi32>
    %c-1_i32 = arith.constant -1 : i32
    %5 = vector.broadcast %c-1_i32 : i32 to vector<8x1xi32>
    %6 = arith.cmpi ne, %4, %5 : vector<8x1xi32>
    %c4_i32 = arith.constant 4 : i32
    %7 = arith.muli %arg0, %c4_i32 : i32
    %8 = arith.addi %7, %arg1 : i32
    %9 = arith.index_cast %8 : i32 to index
    %10 = memref.load %arg2[%9] : memref<8xi32, #tpu.memory_space<smem>>
    %c0_i32_4 = arith.constant 0 : i32
    %11 = arith.cmpi ne, %10, %c0_i32_4 : i32
    %12 = arith.extui %11 : i1 to i32
    %c0_i32_5 = arith.constant 0 : i32
    %13 = arith.cmpi ne, %12, %c0_i32_5 : i32
    scf.if %13 {
      %c128_i32 = arith.constant 128 : i32
      %20 = arith.muli %arg1, %c128_i32 : i32
      %21 = vector.broadcast %20 : i32 to vector<8x1xi32>
      %22 = arith.subi %4, %21 : vector<8x1xi32>
      %c-1_i32_9 = arith.constant -1 : i32
      %23 = vector.broadcast %c-1_i32_9 : i32 to vector<8x1xi32>
      %24 = arith.select %6, %22, %23 : vector<8x1xi1>, vector<8x1xi32>
      %c0_i32_10 = arith.constant 0 : i32
      %25 = vector.broadcast %c0_i32_10 : i32 to vector<8x1xi32>
      %26 = arith.cmpi sge, %24, %25 : vector<8x1xi32>
      %c128_i32_11 = arith.constant 128 : i32
      %27 = vector.broadcast %c128_i32_11 : i32 to vector<8x1xi32>
      %28 = arith.cmpi slt, %24, %27 : vector<8x1xi32>
      %29 = arith.andi %26, %28 : vector<8x1xi1>
      %30 = arith.extui %29 : vector<8x1xi1> to vector<8x1xi32>
      %31 = arith.sitofp %30 : vector<8x1xi32> to vector<8x1xf32>
      %32 = tpu.iota {dimensions = array<i32: 1>} : vector<8x128xi32>
      %33 = vector.broadcast %24 : vector<8x1xi32> to vector<8x128xi32>
      %34 = arith.cmpi eq, %32, %33 : vector<8x128xi32>
      %cst = arith.constant 0.000000e+00 : f32
      %35 = vector.broadcast %cst : f32 to vector<8x128xf32>
      %36 = arith.select %34, %3, %35 : vector<8x128xi1>, vector<8x128xf32>
      %cst_12 = arith.constant dense<0.000000e+00> : vector<8xf32>
      %37 = vector.multi_reduction <add>, %36, %cst_12 [1] : vector<8x128xf32> to vector<8xf32>
      %38 = vector.shape_cast %37 : vector<8xf32> to vector<8x1xf32>
      %cst_13 = arith.constant -1.000000e+00 : f32
      %cst_14 = arith.constant 1.000000e+00 : f32
      %39 = vector.broadcast %cst_13 : f32 to vector<8x1xf32>
      %40 = arith.maximumf %39, %38 : vector<8x1xf32>
      %41 = vector.broadcast %cst_14 : f32 to vector<8x1xf32>
      %42 = arith.minimumf %41, %40 : vector<8x1xf32>
      %cst_15 = arith.constant 0.955336511 : f32
      %43 = vector.broadcast %cst_15 : f32 to vector<8x1xf32>
      %44 = arith.mulf %42, %43 : vector<8x1xf32>
      %45 = arith.mulf %42, %42 : vector<8x1xf32>
      %cst_16 = arith.constant 1.000000e+00 : f32
      %46 = vector.broadcast %cst_16 : f32 to vector<8x1xf32>
      %47 = arith.subf %46, %45 : vector<8x1xf32>
      %cst_17 = arith.constant 0.000000e+00 : f32
      %48 = vector.broadcast %cst_17 : f32 to vector<8x1xf32>
      %49 = arith.maximumf %47, %48 : vector<8x1xf32>
      %50 = math.sqrt %49 : vector<8x1xf32>
      %cst_18 = arith.constant 0.295520216 : f32
      %51 = vector.broadcast %cst_18 : f32 to vector<8x1xf32>
      %52 = arith.mulf %50, %51 : vector<8x1xf32>
      %53 = arith.subf %44, %52 : vector<8x1xf32>
      %54 = arith.subf %53, %38 : vector<8x1xf32>
      %cst_19 = arith.constant 6.400000e+01 : f32
      %55 = vector.broadcast %cst_19 : f32 to vector<8x1xf32>
      %56 = arith.mulf %54, %55 : vector<8x1xf32>
      %cst_20 = arith.constant 6.400000e+01 : f32
      %57 = vector.broadcast %cst_20 : f32 to vector<8x128xf32>
      %58 = arith.mulf %3, %57 : vector<8x128xf32>
      %cst_21 = arith.constant 0.000000e+00 : f32
      %59 = vector.shape_cast %56 : vector<8x1xf32> to vector<8x1xf32>
      %60 = vector.broadcast %59 : vector<8x1xf32> to vector<8x128xf32>
      %61 = vector.broadcast %cst_21 : f32 to vector<8x128xf32>
      %62 = arith.select %34, %60, %61 : vector<8x128xi1>, vector<8x128xf32>
      %63 = arith.addf %58, %62 : vector<8x128xf32>
      %c0_22 = arith.constant 0 : index
      %c0_23 = arith.constant 0 : index
      %64 = vector.load %arg7[%c0_22, %c0_23] : memref<8x1xf32, #tpu.memory_space<vmem>>, vector<8x1xf32>
      %cst_24 = arith.constant dense<0xFF800000> : vector<8xf32>
      %65 = vector.multi_reduction <maximumf>, %63, %cst_24 [1] : vector<8x128xf32> to vector<8xf32>
      %66 = vector.shape_cast %65 : vector<8xf32> to vector<8x1xf32>
      %67 = arith.maximumf %64, %66 : vector<8x1xf32>
      %c0_25 = arith.constant 0 : index
      %c0_26 = arith.constant 0 : index
      %68 = vector.load %arg8[%c0_25, %c0_26] : memref<8x1xf32, #tpu.memory_space<vmem>>, vector<8x1xf32>
      %c0_27 = arith.constant 0 : index
      %c0_28 = arith.constant 0 : index
      %69 = vector.load %arg7[%c0_27, %c0_28] : memref<8x1xf32, #tpu.memory_space<vmem>>, vector<8x1xf32>
      %70 = arith.subf %69, %67 : vector<8x1xf32>
      %71 = math.exp %70 : vector<8x1xf32>
      %72 = arith.mulf %68, %71 : vector<8x1xf32>
      %73 = vector.broadcast %67 : vector<8x1xf32> to vector<8x128xf32>
      %74 = arith.subf %63, %73 : vector<8x128xf32>
      %75 = math.exp %74 : vector<8x128xf32>
      %cst_29 = arith.constant dense<0.000000e+00> : vector<8xf32>
      %76 = vector.multi_reduction <add>, %75, %cst_29 [1] : vector<8x128xf32> to vector<8xf32>
      %77 = vector.shape_cast %76 : vector<8xf32> to vector<8x1xf32>
      %78 = arith.addf %72, %77 : vector<8x1xf32>
      %c0_30 = arith.constant 0 : index
      %c0_31 = arith.constant 0 : index
      %79 = vector.load %arg8[%c0_30, %c0_31] : memref<8x1xf32, #tpu.memory_space<vmem>>, vector<8x1xf32>
      tpu.vector_store %arg8[%c0_30, %c0_31], %78 {strides = array<i32>} : memref<8x1xf32, #tpu.memory_space<vmem>>, vector<8x1xf32>,
      %c0_32 = arith.constant 0 : index
      %c0_33 = arith.constant 0 : index
      %80 = vector.load %arg7[%c0_32, %c0_33] : memref<8x1xf32, #tpu.memory_space<vmem>>, vector<8x1xf32>
      tpu.vector_store %arg7[%c0_32, %c0_33], %67 {strides = array<i32>} : memref<8x1xf32, #tpu.memory_space<vmem>>, vector<8x1xf32>,
      %c0_34 = arith.constant 0 : index
      %c0_35 = arith.constant 0 : index
      %81 = vector.load %arg9[%c0_34, %c0_35] : memref<8x1xf32, #tpu.memory_space<vmem>>, vector<8x1xf32>
      %cst_36 = arith.constant 6.400000e+01 : f32
      %82 = vector.broadcast %cst_36 : f32 to vector<8x1xf32>
      %83 = arith.mulf %53, %82 : vector<8x1xf32>
      %84 = arith.mulf %31, %83 : vector<8x1xf32>
      %85 = arith.addf %81, %84 : vector<8x1xf32>
      %c0_37 = arith.constant 0 : index
      %c0_38 = arith.constant 0 : index
      %86 = vector.load %arg9[%c0_37, %c0_38] : memref<8x1xf32, #tpu.memory_space<vmem>>, vector<8x1xf32>
      tpu.vector_store %arg9[%c0_37, %c0_38], %85 {strides = array<i32>} : memref<8x1xf32, #tpu.memory_space<vmem>>, vector<8x1xf32>,
    } else {
    }
    %c0_i32_6 = arith.constant 0 : i32
    %14 = arith.cmpi eq, %10, %c0_i32_6 : i32
    %15 = arith.extui %14 : i1 to i32
    %c0_i32_7 = arith.constant 0 : i32
    %16 = arith.cmpi ne, %15, %c0_i32_7 : i32
    scf.if %16 {
      %cst = arith.constant 6.400000e+01 : f32
      %20 = vector.broadcast %cst : f32 to vector<8x128xf32>
      %21 = arith.mulf %3, %20 : vector<8x128xf32>
      %c0_9 = arith.constant 0 : index
      %c0_10 = arith.constant 0 : index
      %22 = vector.load %arg7[%c0_9, %c0_10] : memref<8x1xf32, #tpu.memory_space<vmem>>, vector<8x1xf32>
      %cst_11 = arith.constant dense<0xFF800000> : vector<8xf32>
      %23 = vector.multi_reduction <maximumf>, %21, %cst_11 [1] : vector<8x128xf32> to vector<8xf32>
      %24 = vector.shape_cast %23 : vector<8xf32> to vector<8x1xf32>
      %25 = arith.maximumf %22, %24 : vector<8x1xf32>
      %c0_12 = arith.constant 0 : index
      %c0_13 = arith.constant 0 : index
      %26 = vector.load %arg8[%c0_12, %c0_13] : memref<8x1xf32, #tpu.memory_space<vmem>>, vector<8x1xf32>
      %c0_14 = arith.constant 0 : index
      %c0_15 = arith.constant 0 : index
      %27 = vector.load %arg7[%c0_14, %c0_15] : memref<8x1xf32, #tpu.memory_space<vmem>>, vector<8x1xf32>
      %28 = arith.subf %27, %25 : vector<8x1xf32>
      %29 = math.exp %28 : vector<8x1xf32>
      %30 = arith.mulf %26, %29 : vector<8x1xf32>
      %31 = vector.broadcast %25 : vector<8x1xf32> to vector<8x128xf32>
      %32 = arith.subf %21, %31 : vector<8x128xf32>
      %33 = math.exp %32 : vector<8x128xf32>
      %cst_16 = arith.constant dense<0.000000e+00> : vector<8xf32>
      %34 = vector.multi_reduction <add>, %33, %cst_16 [1] : vector<8x128xf32> to vector<8xf32>
      %35 = vector.shape_cast %34 : vector<8xf32> to vector<8x1xf32>
      %36 = arith.addf %30, %35 : vector<8x1xf32>
      %c0_17 = arith.constant 0 : index
      %c0_18 = arith.constant 0 : index
      %37 = vector.load %arg8[%c0_17, %c0_18] : memref<8x1xf32, #tpu.memory_space<vmem>>, vector<8x1xf32>
      tpu.vector_store %arg8[%c0_17, %c0_18], %36 {strides = array<i32>} : memref<8x1xf32, #tpu.memory_space<vmem>>, vector<8x1xf32>,
      %c0_19 = arith.constant 0 : index
      %c0_20 = arith.constant 0 : index
      %38 = vector.load %arg7[%c0_19, %c0_20] : memref<8x1xf32, #tpu.memory_space<vmem>>, vector<8x1xf32>
      tpu.vector_store %arg7[%c0_19, %c0_20], %25 {strides = array<i32>} : memref<8x1xf32, #tpu.memory_space<vmem>>, vector<8x1xf32>,
    } else {
    }
    %c3_i32 = arith.constant 3 : i32
    %17 = arith.cmpi eq, %arg1, %c3_i32 : i32
    %18 = arith.extui %17 : i1 to i32
    %c0_i32_8 = arith.constant 0 : i32
    %19 = arith.cmpi ne, %18, %c0_i32_8 : i32
    scf.if %19 {
      %20 = arith.extui %6 : vector<8x1xi1> to vector<8x1xi32>
      %21 = arith.sitofp %20 : vector<8x1xi32> to vector<8x1xf32>
      %c0_9 = arith.constant 0 : index
      %c0_10 = arith.constant 0 : index
      %22 = vector.load %arg7[%c0_9, %c0_10] : memref<8x1xf32, #tpu.memory_space<vmem>>, vector<8x1xf32>
      %c0_11 = arith.constant 0 : index
      %c0_12 = arith.constant 0 : index
      %23 = vector.load %arg8[%c0_11, %c0_12] : memref<8x1xf32, #tpu.memory_space<vmem>>, vector<8x1xf32>
      %24 = math.log %23 : vector<8x1xf32>
      %25 = arith.addf %22, %24 : vector<8x1xf32>
      %c0_13 = arith.constant 0 : index
      %c0_14 = arith.constant 0 : index
      %26 = vector.load %arg9[%c0_13, %c0_14] : memref<8x1xf32, #tpu.memory_space<vmem>>, vector<8x1xf32>
      %27 = arith.subf %25, %26 : vector<8x1xf32>
      %28 = arith.mulf %27, %21 : vector<8x1xf32>
      %c0_15 = arith.constant 0 : index
      %c0_16 = arith.constant 0 : index
      %29 = vector.load %arg5[%c0_15, %c0_16] : memref<8x1xf32, #tpu.memory_space<vmem>>, vector<8x1xf32>
      tpu.vector_store %arg5[%c0_15, %c0_16], %28 {strides = array<i32>} : memref<8x1xf32, #tpu.memory_space<vmem>>, vector<8x1xf32>,
      %c0_17 = arith.constant 0 : index
      %c0_18 = arith.constant 0 : index
      %30 = vector.load %arg6[%c0_17, %c0_18] : memref<8x1xf32, #tpu.memory_space<vmem>>, vector<8x1xf32>
      tpu.vector_store %arg6[%c0_17, %c0_18], %21 {strides = array<i32>} : memref<8x1xf32, #tpu.memory_space<vmem>>, vector<8x1xf32>,
    } else {
    }
    return
  }
  func.func @transform_0(%arg0: i32, %arg1: i32, %arg2: memref<8xi32, #tpu.memory_space<smem>>) -> (i32, i32) {
    %c0_i32 = arith.constant 0 : i32
    return %arg0, %arg1 : i32, i32
  }
  func.func @transform_1(%arg0: i32, %arg1: i32, %arg2: memref<8xi32, #tpu.memory_space<smem>>) -> (i32, i32) {
    %c0_i32 = arith.constant 0 : i32
    %c0_i32_0 = arith.constant 0 : i32
    return %arg0, %c0_i32 : i32, i32
  }
  func.func @transform_2(%arg0: i32, %arg1: i32, %arg2: memref<8xi32, #tpu.memory_space<smem>>) -> (i32, i32) {
    %c0_i32 = arith.constant 0 : i32
    %c0_i32_0 = arith.constant 0 : i32
    return %arg0, %c0_i32 : i32, i32
  }
  func.func @transform_3(%arg0: i32, %arg1: i32, %arg2: memref<8xi32, #tpu.memory_space<smem>>) -> (i32, i32) {
    %c0_i32 = arith.constant 0 : i32
    %c0_i32_0 = arith.constant 0 : i32
    return %arg0, %c0_i32 : i32, i32
  }
}

</mosaic_0001>

<bundles_post_ra>
// kernel: tpu_custom_call.1
= control target key start
LH: loop header
LB: loop body
LE: loop exit
PB: predicated region body
PF: predicated region fallthrough
CT: control target
= control target key end

     0   :  { %s724_s18 = smov [#allocation6]   ;;  %s922_s0 = inlined_call_operand.vmem [shape: s32[8], index: 0, kind: input, shape index: {}]   ;;  %s923_s1 = inlined_call_operand.hbm [shape: f32[16,512], index: 1, kind: input, shape index: {}]   ;;  %s924_s2 = inlined_call_operand.vmem [shape: s32[16,1], index: 2, kind: input, shape index: {}]   ;;  %s925_s3 = inlined_call_operand.vmem [shape: f32[16,1], index: 3, kind: output, shape index: {0}]   ;;  %s926_s4 = inlined_call_operand.vmem [shape: f32[16,1], index: 4, kind: output, shape index: {1}]  }
   0x1   :  { %s11_s17 = sshll.u32 %s922_s0, 4  ;;  %s12_s17 = int_to_ptr.vmem [resolvable:$true] %s11_s17 }
   0x2   :  { %14 = dma.vmem_to_smem %s12_s17, 16, %s724_s18, [#allocation5] }
   0x3   :  { %686 = dma.done.wait [#allocation5], 16 }
   0x4   :  { %687 = vsyncadd [#allocation5], 4294967280 }
   0x5   :  { %17 = sfence }
   0x6   :  { %18 = vsyncpa [#allocation8], 0 }
   0x7   :  { %20 = vsyncpa [#allocation8 + $0x1], 0  ;;  %s759_s19 = smov 0   ;;  %s761_s20 = smov 0  }
   0x8   :  { %s763_s21 = smov 0   ;;  %s765_s22 = smov 0  }
   0x9   :  { %s767_s23 = smov 0   ;;  %s769_s24 = smov 0  }
   0xa   :  { %s771_s0 = smov 0   ;;  %s773_s25 = smov 0  }
   0xb LB: > { %s496_s26 = sadd.s32 4294967295, %s722_s25   ;;  %s35_s27 = sadd.s32 1, %s714_s24  ;;  %s722_s25 = sphi %s773_s25, %s26_s25   ;;  %s718_s0 = sphi %s771_s0, %s935_s0   ;;  %s714_s24 = sphi %s769_s24, %s934_s24   ;;  %s710_s23 = sphi %s767_s23, %s933_s23   ;;  %s706_s22 = sphi %s765_s22, %s932_s22   ;;  %s702_s21 = sphi %s763_s21, %s931_s21   ;;  %s698_s20 = sphi %s761_s20, %s930_s20   ;;  %s694_s19 = sphi %s759_s19, %s929_s19  }
   0xc   : > { %p36_p0 = scmp.ge.s32.totalorder %s35_s27, 4  ;;  %s38_s28 = sadd.s32 1, %s718_s0 }
   0xd   : > { %s47_s29 = sadd.s32 1, %s702_s21  ;;  %p54_p1 = scmp.ne.s32.totalorder %s702_s21, %s698_s20 }
   0xe   : > { %s937_s27 = smov (%p36_p0, %s35_s27), 0  ;;  %s939_s28 = smov (!%p36_p0, %s38_s28), %s718_s0 }
   0xf   : > { %s43_s30 = ssub.s32 %s714_s24, %s937_s27  ;;  %p55_p2 = scmp.eq.s32.totalorder %s722_s25, 0 }
  0x10   : > { %p40_p3 = scmp.ge.s32.totalorder %s939_s28, 2  ;;  %p60_p4 = scmp.ne.s32.totalorder %s698_s20, %s694_s19 }
  0x11   : > { %p810_p5 = por %p55_p2, %p54_p1  ;;  %p61_p6 = scmp.eq.s32.totalorder %s496_s26, 0 }
  0x12   : > { %s941_s28 = smov (%p40_p3, %s939_s28), 0  ;;  %p525_p8 = scmp.lt.s32.totalorder %s722_s25, 8 }
  0x13   : > { %p816_p7 = por %p61_p6, %p60_p4  ;;  %s42_s7 = ssub.s32 %s718_s0, %s941_s28 }
  0x14   : > { %s44_s8 = sor.u32 %s43_s30, %s42_s7  ;;  %s162_s9 = sand.u32 1, %s702_s21  }
  0x15   : > { %p45_p9 = scmp.eq.s32.totalorder %s44_s8, 0  ;;  %s500_s10 = sshll.u32 %s162_s9, 3 }
  0x16   : > { %s501_s11 = sshll.u32 %s718_s0, 2  ;;  %s166_s15 = scalar_lea.vmem [#allocation7], %s500_s10 }
  0x17   : > { %s826_s12 = scalar_select %p45_p9, %s702_s21, %s47_s29  }
  0x18   : > { %s170_s13 = sadd.s32 %s714_s24, %s501_s11  ;;  %s176_s16 = sshll.u32 %s166_s15, 4  ;;  %s177_s16 = int_to_ptr.vmem [resolvable:$true] %s176_s16 }
  0x19   : > { %s502_s14 = sshll.u32 %s170_s13, 3  ;;  %p522_p10 = pnand %p525_p8, %p810_p5 }
  0x1a   : > { %s172_s19 = scalar_lea.hbm %s923_s1, %s502_s14  ;;  %p503_p11 = scmp.ge.s32.totalorder %s722_s25, 1 }
  0x1b   : > { %s174_s26 = sshll.u32 %s172_s19, 4  ;;  %p188_p12 = scmp.lt.s32.totalorder %s722_s25, 9  ;;  %s175_s26 = int_to_ptr.hbm [resolvable:$true] %s174_s26 }
  0x1c   : > { %s163_s30 = scalar_lea.sflag [#allocation8], %s162_s9 }
  0x1d   : > { %524 = dma.hbm_to_vmem [thread:$0]  (!%p522_p10), %s175_s26, 128, %s177_s16, %s163_s30  }
  0x1e   : > { %p189_p13 = pnand %p503_p11, %p188_p12 }
  0x1f   : > { %s194_s29 = sand.u32 (!%p189_p13), 1, %s698_s20  }
  0x20   : > { %192 = sbr.rel (%p189_p13) target bundleno = 1101 (0x44d), region = 28  ;;  %s504_s7 = sshll.u32 (!%p189_p13), %s194_s29, 3 }
  0x21   : > { %s195_s8 = scalar_lea.sflag (!%p189_p13), [#allocation8], %s194_s29  ;;  %s198_s10 = scalar_lea.vmem (!%p189_p13), [#allocation7], %s504_s7 }
  0x25   : > { %689 = dma.done.wait (%p816_p7), %s195_s8, 128  }
  0x26   : > { %691 = vsyncadd (%p816_p7), %s195_s8, 4294967168  ;;  %p229_p0 = scmp.lt.s32.totalorder %s710_s23, 1  ;;  %p508_p1 = scmp.ne.s32.totalorder %s706_s22, 0 }
  0x28   : > { %s230_s5 = scalar_select %p229_p0, %s710_s23, 1 }
  0x29   : > { %244 = sbr.rel (%p508_p1) target bundleno = 50 (0x32), region = 36 }
  0x2a   : > { %s845_s11 = sshll.u32 %s230_s5, 3 }
  0x2b   : > { %s232_s14 = scalar_lea.vmem %s924_s2, %s845_s11  ;;  %s236_s17 = scalar_lea.vmem %s925_s3, %s845_s11 }
  0x2c   : > { %s240_s19 = scalar_lea.vmem %s926_s4, %s845_s11 }
  0x2e   : > { %vm245_vm0 = vcmask 7168   ;;  %v725_v0 = vmov -inf   ;;  %v726_v1 = vmov 0.0  }
  0x2f   : > { %246 = vst.msk [vmem:[#allocation2] sm:$0xff] %vm245_vm0, %v725_v0 }
  0x30   : > { %247 = vst.msk [vmem:[#allocation3] sm:$0xff] %vm245_vm0, %v726_v1 }
  0x31   : > { %248 = vst.msk [vmem:[#allocation4] sm:$0xff] %vm245_vm0, %v726_v1 }
  0x32 PF: > { %v860_v2 = vld [vmem:[%s198_s10] sm:$0xff]  ;;  %s509_s26 = sshll.u32 %s710_s23, 2 }
  0x33   : > { %v862_v3 = vld [vmem:[%s232_s14] sm:$0xff]  ;;  %s253_s30 = sadd.s32 %s706_s22, %s509_s26 }
  0x34   : > { %vm251_vm1 = vcmp.ne.s32.totalorder %v862_v3, 4294967295  ;;  %s867_s29 = sld [smem:[#allocation6 + %s253_s30]] }
  0x3a   : > { %p510_p2 = scmp.eq.s32.totalorder %s867_s29, 0 }
  0x3b   : > { %s511_s7 = sshll.u32 (!%p510_p2), %s706_s22, 7 }
  0x3c   : > { %258 = sbr.rel (%p510_p2) target bundleno = 705 (0x2c1), region = 40 }
  0x41   : > { %v727_v4 = vmov 0   ;;  %v260_v5 = vstv %s511_s7  ;;  %v268_v8 = vlaneseq  ;;  %v728_v30 = vmov 0.0   ;;  %v325_v34 = vld [vmem:[#allocation4] sm:$0xff]  ;;  %v302_v41 = vld [vmem:[#allocation2] sm:$0xff]  ;;  %v306_v51 = vld [vmem:[#allocation3] sm:$0xff] }
  0x42   : > { %597 = vset.pattern.permute.xlu0 %v727_v4  ;;  %598 = vset.pattern.permute.xlu1 %v727_v4  ;;  %v261_v6 = vsub.s32 %v862_v3, %v260_v5  ;;  %v299_v35 = vmul.f32 64.0, %v860_v2  ;;  %vm322_vm8 = vcmask 7168  }
  0x43   : > { %v269_v9 = vand.u32 127, %v268_v8 }
  0x44   : > { %v262_v7 = vsel %vm251_vm1, %v261_v6, 4294967295 }
  0x45   : > { %271 = vperm.xlu0 %597, %v262_v7   ;;  %vm263_vm3 = vcmp.ge.s32.totalorder %v262_v7, 0  ;;  %vm264_vm4 = vcmp.lt.s32.totalorder %v262_v7, 128 }
  0x46   : > { %vm265_vm7 = vmand %vm263_vm3, %vm264_vm4 }
  0x47   : > { %v512_v31 = vsel %vm265_vm7, 1.0, %v728_v30 }
  0xb7   : > { %v272_v10 = vpop.permute.xlu0 %271 }
  0xb8   : > { %vm273_vm2 = vcmp.eq.s32.totalorder %v269_v9, %v272_v10 }
  0xb9   : > { %v274_v11 = vsel %vm273_vm2, %v860_v2, 0.0 }
  0xba   : > { %275 = vadd.xlane.f32.xlu0 %v274_v11 }
 0x12d   : > { %v276_v12 = vpop.xlane.xlu0 %275 }
 0x12e   : > { %v513_v13 = vclamps-f32 %v276_v12, 1.0 }
 0x130   : > { %v280_v14 = vmul.f32 %v513_v13, %v513_v13  ;;  %v279_v27 = vmul.f32 0.9553365, %v513_v13 }
 0x132   : > { %v281_v15 = vsub.f32 1.0, %v280_v14 }
 0x134   : > { %v282_v16 = vmax.f32 %v281_v15, 0.0 }
 0x136   : > { %599 = vrsqrt.f32 %v282_v16  ;;  %vm290_vm5 = vcmp.eq.f32.partialorder %v282_v16, inf  ;;  %v293_v24 = vand.u32 2147483648, %v282_v16  ;;  %vm292_vm6 = vcmp.eq.f32.partialorder %v282_v16, 0.0 }
 0x13c   : > { %v600_v17 = vpop.eup %599 }
 0x13d   : > { %v284_v18 = vmul.f32 %v600_v17, %v282_v16 }
 0x13f   : > { %v285_v19 = vmul.f32 %v600_v17, %v284_v18 }
 0x141   : > { %v286_v20 = vmul.f32 0.5, %v285_v19 }
 0x143   : > { %v287_v21 = vsub.f32 1.5, %v286_v20 }
 0x145   : > { %v288_v22 = vmul.f32 %v600_v17, %v287_v21 }
 0x147   : > { %v289_v23 = vmul.f32 %v288_v22, %v282_v16 }
 0x149   : > { %v291_v25 = vsel %vm290_vm5, %v282_v16, %v289_v23 }
 0x14a   : > { %v294_v26 = vsel %vm292_vm6, %v293_v24, %v291_v25 }
 0x14b   : > { %v295_v28 = vmul.f32 0.29552022, %v294_v26 }
 0x14d   : > { %v296_v29 = vsub.f32 %v279_v27, %v295_v28 }
 0x14f   : > { %v297_v32 = vsub.f32 %v296_v29, %v276_v12  ;;  %v326_v33 = vmul.f32 64.0, %v296_v29 }
 0x151   : > { %v298_v36 = vmul.f32 64.0, %v297_v32  ;;  %v327_v37 = vmul.f32 %v512_v31, %v326_v33 }
 0x153   : > { %v328_v38 = vadd.f32 %v327_v37, %v325_v34  ;;  %v300_v39 = vsel %vm273_vm2, %v298_v36, 0.0 }
 0x154   : > { %v301_v40 = vadd.f32 %v300_v39, %v299_v35 }
 0x155   : > { %329 = vst.msk [vmem:[#allocation4] sm:$0xff] %vm322_vm8, %v328_v38 }
 0x156   : > { %303 = vmax.xlane.f32.xlu1 %v301_v40 }
 0x1c9   : > { %v304_v42 = vpop.xlane.xlu1 %303 }
 0x1ca   : > { %v305_v43 = vmax.f32 %v302_v41, %v304_v42 }
 0x1cc   : > { %v307_v44 = vsub.f32 %v302_v41, %v305_v43  ;;  %324 = vst.msk [vmem:[#allocation2] sm:$0xff] %vm322_vm8, %v305_v43  ;;  %313 = vperm.xlu1 %598, %v305_v43  }
 0x1ce   : > { %v308_v49 = vmul.f32 1.442695, %v307_v44 }
 0x23e   : > { %v314_v45 = vpop.permute.xlu1 %313 }
 0x23f   : > { %v316_v46 = vsub.f32 %v301_v40, %v314_v45 }
 0x241   : > { %v317_v47 = vmul.f32 1.442695, %v316_v46 }
 0x243   : > { %601 = vpow2.f32 %v317_v47 }
 0x244   : > { %603 = vpow2.f32 %v308_v49 }
 0x249   : > { %v602_v48 = vpop.eup %601 }
 0x24a   : > { %319 = vadd.xlane.f32.xlu2 %v602_v48  ;;  %v604_v50 = vpop.eup %603 }
 0x24b   : > { %v310_v52 = vmul.f32 %v604_v50, %v306_v51 }
 0x2bd   : > { %v320_v53 = vpop.xlane.xlu2 %319 }
 0x2be   : > { %v321_v54 = vadd.f32 %v320_v53, %v310_v52 }
 0x2c0   : > { %323 = vst.msk [vmem:[#allocation3] sm:$0xff] %vm322_vm8, %v321_v54 }
 0x2c1 PF: > { %p514_p3 = scmp.ne.s32.totalorder %s867_s29, 0 }
 0x2c3   : > { %333 = sbr.rel (%p514_p3) target bundleno = 1077 (0x435), region = 44 }
 0x2c8   : > { %v334_v55 = vmul.f32 64.0, %v860_v2  ;;  %v729_v56 = vmov 0   ;;  %v335_v57 = vld [vmem:[#allocation2] sm:$0xff]  ;;  %vm355_vm9 = vcmask 7168   ;;  %v339_v4 = vld [vmem:[#allocation3] sm:$0xff] }
 0x2c9   : > { %605 = vset.pattern.permute.xlu0 %v729_v56 }
 0x2ca   : > { %336 = vmax.xlane.f32.xlu0 %v334_v55 }
 0x33d   : > { %v337_v58 = vpop.xlane.xlu0 %336 }
 0x33e   : > { %v338_v59 = vmax.f32 %v335_v57, %v337_v58 }
 0x340   : > { %v340_v60 = vsub.f32 %v335_v57, %v338_v59  ;;  %357 = vst.msk [vmem:[#allocation2] sm:$0xff] %vm355_vm9, %v338_v59  ;;  %346 = vperm.xlu0 %605, %v338_v59  }
 0x342   : > { %v341_v1 = vmul.f32 1.442695, %v340_v60 }
 0x3b2   : > { %v347_v61 = vpop.permute.xlu0 %346 }
 0x3b3   : > { %v349_v62 = vsub.f32 %v334_v55, %v347_v61 }
 0x3b5   : > { %v350_v63 = vmul.f32 1.442695, %v349_v62 }
 0x3b7   : > { %606 = vpow2.f32 %v350_v63 }
 0x3b8   : > { %608 = vpow2.f32 %v341_v1 }
 0x3bd   : > { %v607_v0 = vpop.eup %606 }
 0x3be   : > { %352 = vadd.xlane.f32.xlu1 %v607_v0  ;;  %v609_v2 = vpop.eup %608 }
 0x3bf   : > { %v343_v5 = vmul.f32 %v609_v2, %v339_v4 }
 0x431   : > { %v353_v6 = vpop.xlane.xlu1 %352 }
 0x432   : > { %v354_v7 = vadd.f32 %v353_v6, %v343_v5 }
 0x434   : > { %356 = vst.msk [vmem:[#allocation3] sm:$0xff] %vm355_vm9, %v354_v7 }
 0x435 PF: > { %p515_p4 = scmp.ne.s32.totalorder %s706_s22, 3 }
 0x437   : > { %361 = sbr.rel (%p515_p4) target bundleno = 1101 (0x44d), region = 48 }
 0x43c   : > { %v365_v8 = vld [vmem:[#allocation3] sm:$0xff]  ;;  %vm372_vm10 = vcmask 7168   ;;  %v730_v9 = vmov 0.0   ;;  %v364_v12 = vld [vmem:[#allocation2] sm:$0xff]  ;;  %v369_v14 = vld [vmem:[#allocation4] sm:$0xff] }
 0x43d   : > { %v516_v10 = vsel %vm251_vm1, 1.0, %v730_v9  ;;  %610 = vlog2.f32 %v365_v8 }
 0x43e   : > { %374 = vst.msk [vmem:[%s240_s19] sm:$0xff] %vm372_vm10, %v516_v10 }
 0x443   : > { %v611_v11 = vpop.eup %610 }
 0x444   : > { %v367_v13 = vmul.f32 0.6931472, %v611_v11 }
 0x446   : > { %v368_v15 = vadd.f32 %v367_v13, %v364_v12 }
 0x448   : > { %v370_v16 = vsub.f32 %v368_v15, %v369_v14 }
 0x44a   : > { %v371_v17 = vmul.f32 %v516_v10, %v370_v16 }
 0x44c   : > { %373 = vst.msk [vmem:[%s236_s17] sm:$0xff] %vm372_vm10, %v371_v17 }
 0x44d PF: > { %s26_s25 = sadd.s32 1, %s722_s25   ;;  %s929_s19 = smov %s698_s20 }
 0x44e   : > { %p23_p5 = scmp.ge.s32.totalorder %s26_s25, 10   ;;  %s930_s20 = smov %s702_s21 }
 0x44f   : > { %s931_s21 = smov %s826_s12  ;;  %s932_s22 = smov %s714_s24 }
 0x450   : > { %s933_s23 = smov %s718_s0  ;;  %s934_s24 = smov %s937_s27 }
 0x451   : > { %s935_s0 = smov %s941_s28  ;;  %25 = sbr.rel (!%p23_p5) target bundleno = 11 (0xb), region = 99 }
 0x456   :  { %408 = vsyncpa [#allocation8], 1 }
 0x457   :  { %410 = vsyncpa [#allocation8 + $0x1], 1 }

</bundles_post_ra>
